<compile_context>
chip_gen: v5e
topology: v5e:2x2
jax: 0.10.0
libtpu: 0.0.40
codegen_flags: <defaults>
</compile_context>

<pallas_src>
import functools

import jax
import jax.numpy as jnp
from jax import lax
from jax.experimental import pallas as pl
from jax.experimental.pallas import tpu as pltpu


def _round_up(x, m):
    return ((x + m - 1) // m) * m


# ---------------------------------------------------------------------------
# Fused kernel: out[i-block] (+)= adj[i,k-block] @ (features[k-block] @ weight)
# ---------------------------------------------------------------------------
def _gnn_fused_kernel(adj_ref, feat_ref, w_ref, out_ref, *,
                      active: bool, n_nodes: int, tile_k: int):
    k = pl.program_id(1)

    adj = adj_ref[...]
    feat = feat_ref[...]

    # Mask the K remainder (adj columns / feature rows past n_nodes).  Only
    # emitted when tile_k does not divide n_nodes, so the common divisible
    # case pays nothing and the wrapper never pads the O(N^2) adjacency.
    if n_nodes % tile_k != 0:
        col0 = k * tile_k
        adj_cols = col0 + lax.broadcasted_iota(jnp.int32, adj.shape, 1)
        adj = jnp.where(adj_cols < n_nodes, adj, jnp.zeros_like(adj))
        feat_rows = col0 + lax.broadcasted_iota(jnp.int32, feat.shape, 0)
        feat = jnp.where(feat_rows < n_nodes, feat, jnp.zeros_like(feat))

    # support tile, recomputed per step from the VMEM-resident weight.
    sup = jnp.dot(feat, w_ref[...], preferred_element_type=jnp.float32)
    if adj.dtype != jnp.float32:
        # bf16 adjacency path: feed the MXU bf16 x bf16, accumulate fp32.
        sup = sup.astype(adj.dtype)

    part = jnp.dot(adj, sup, preferred_element_type=jnp.float32)

    @pl.when(k == 0)
    def _init():
        out_ref[...] = part

    @pl.when(k != 0)
    def _accum():
        out_ref[...] += part

    if active:
        @pl.when(k == pl.num_programs(1) - 1)
        def _finalize():
            out_ref[...] = jnp.maximum(out_ref[...], 0.0)


# ---------------------------------------------------------------------------
# Wrapper
# ---------------------------------------------------------------------------
@functools.partial(
    jax.jit,
    static_argnames=("active", "tile_m", "tile_k", "matmul_dtype",
                     "vmem_limit_bytes"))
def gnn_layer(adj, features, weight, active=False, *,
              tile_m=512, tile_k=1024, matmul_dtype=None,
              vmem_limit_bytes=None):
    """Pallas implementation of GNNLayer.forward(adj, features, active).

    matmul_dtype: optional dtype (e.g. jnp.bfloat16) for the adjacency operand
    on bf16-native MXUs (v6e/v7x).  Accumulation stays fp32.  Passing `adj`
    already in that dtype avoids the one-time cast pass here.
    vmem_limit_bytes: optional scoped-VMEM override (e.g. on v5e when forcing
    tiles larger than the defaults chosen here).
    """
    n_nodes, in_features = features.shape
    in_features_w, out_features = weight.shape
    assert in_features == in_features_w
    assert adj.shape == (n_nodes, n_nodes)

    if matmul_dtype is not None and adj.dtype != jnp.dtype(matmul_dtype):
        adj = adj.astype(matmul_dtype)

    # Lane-dense output / weight columns: pad out_features to a multiple of
    # 128 (weight is tiny; the adjacency is never padded).
    f_pad = _round_up(out_features, 128)
    if f_pad != out_features:
        weight = jnp.pad(weight, ((0, 0), (0, f_pad - out_features)))

    adj_isz = jnp.dtype(adj.dtype).itemsize
    feat_isz = jnp.dtype(features.dtype).itemsize
    w_isz = jnp.dtype(weight.dtype).itemsize

    # ---- tile sizing: clamp to the problem, then shrink to a VMEM budget ---
    tm = min(tile_m, _round_up(n_nodes, 8))      # sublane-aligned
    tk = min(tile_k, _round_up(n_nodes, 128))    # lane-aligned

    def _usage(tm_, tk_):
        # double-buffered inputs/outputs (conservative estimate).
        return (2 * tm_ * tk_ * adj_isz          # adj tile
                + 2 * tk_ * in_features * feat_isz   # features tile
                + 2 * in_features * f_pad * w_isz    # resident weight
                + 2 * tm_ * f_pad * 4)               # fp32 output block

    default_budget = 14 * 1024 * 1024            # fits v5e's 16 MiB scoped VMEM
    budget = (int(vmem_limit_bytes * 0.9)
              if vmem_limit_bytes is not None else default_budget)
    while _usage(tm, tk) > budget and tk > 256:
        tk = max(128, _round_up(tk // 2, 128))
    while _usage(tm, tk) > budget and tm > 256:
        tm = max(8, _round_up(tm // 2, 8))

    grid = (pl.cdiv(n_nodes, tm), pl.cdiv(n_nodes, tk))
    nm_tiles = grid[0]

    params = {"dimension_semantics": ("parallel", "arbitrary")}
    if vmem_limit_bytes is not None:
        params["vmem_limit_bytes"] = int(vmem_limit_bytes)
    elif _usage(tm, tk) > default_budget:
        params["vmem_limit_bytes"] = int(_usage(tm, tk) * 1.5) + (2 << 20)

    # Honest byte accounting: adj streamed once, features re-streamed once per
    # M tile (small), weight resident, fp32 output written once.
    flops = 2 * n_nodes * n_nodes * f_pad + 2 * nm_tiles * n_nodes * in_features * f_pad
    bytes_accessed = (n_nodes * n_nodes * adj_isz
                      + nm_tiles * n_nodes * in_features * feat_isz
                      + in_features * f_pad * w_isz
                      + n_nodes * f_pad * 4)

    out_p = pl.pallas_call(
        functools.partial(_gnn_fused_kernel, active=active,
                          n_nodes=n_nodes, tile_k=tk),
        out_shape=jax.ShapeDtypeStruct((n_nodes, f_pad), jnp.float32),
        grid_spec=pltpu.PrefetchScalarGridSpec(
            num_scalar_prefetch=0,
            grid=grid,
            in_specs=[
                # adj: (tm, tk) block at (i, k) — the dominant HBM stream.
                pl.BlockSpec((tm, tk), lambda i, k: (i, k)),
                # features: (tk, in_features) block at (k, 0).
                pl.BlockSpec((tk, in_features), lambda i, k: (k, 0)),
                # weight: fully resident (fetched once, block index constant).
                pl.BlockSpec((in_features, f_pad), lambda i, k: (0, 0)),
            ],
            # Output block is K-invariant -> VMEM-resident fp32 accumulator.
            out_specs=pl.BlockSpec((tm, f_pad), lambda i, k: (i, 0)),
        ),
        compiler_params=pltpu.CompilerParams(**params),
        cost_estimate=pl.CostEstimate(
            flops=flops, transcendentals=0, bytes_accessed=bytes_accessed),
    )(adj, features, weight)

    if f_pad != out_features:
        out_p = out_p[:, :out_features]
    return out_p


def xavier_uniform(key, shape, dtype=jnp.float32):
    """torch.nn.init.xavier_uniform_ equivalent for a 2-D weight."""
    fan_in, fan_out = shape
    limit = (6.0 / (fan_in + fan_out)) ** 0.5
    return jax.random.uniform(key, shape, dtype, minval=-limit, maxval=limit)


if __name__ == "__main__":
    # Small, deterministic example shapes.
    n_nodes = 64
    in_features = 16
    out_features = 32

    key = jax.random.PRNGKey(0)
    k_adj, k_feat, k_w = jax.random.split(key, 3)

    # Dense normalized adjacency-like matrix: row-stochastic, nonnegative.
    raw = jax.random.uniform(k_adj, (n_nodes, n_nodes), jnp.float32)
    mask = (raw > 0.7).astype(jnp.float32) + jnp.eye(n_nodes, dtype=jnp.float32)
    adj = mask / jnp.sum(mask, axis=1, keepdims=True)

    features = jax.random.normal(k_feat, (n_nodes, in_features), jnp.float32)
    weight = xavier_uniform(k_w, (in_features, out_features))

    # Run the fused Pallas kernel (both branches of `active`).
    out = gnn_layer(adj, features, weight, active=False)
    out_relu = gnn_layer(adj, features, weight, active=True)
    jax.block_until_ready(out)
    jax.block_until_ready(out_relu)

    # Reference check against plain JAX.
    ref = adj @ (features @ weight)
    ref_relu = jnp.maximum(ref, 0.0)
    assert out.shape == (n_nodes, out_features)
    assert jnp.allclose(out, ref, atol=1e-4, rtol=1e-4)
    assert jnp.allclose(out_relu, ref_relu, atol=1e-4, rtol=1e-4)

    # Optional bf16 adjacency path (v6e/v7x): fp32 accumulation, looser tol.
    out_bf16 = gnn_layer(adj, features, weight, active=True,
                         matmul_dtype=jnp.bfloat16)
    jax.block_until_ready(out_bf16)
    assert jnp.allclose(out_bf16, ref_relu, atol=5e-2, rtol=5e-2)

    print("KERNEL_OK")
</pallas_src>

<mosaic_0001>
module attributes {stable_mosaic.version = 11 : i64} {
  func.func @_gnn_fused_kernel(%arg0: i32, %arg1: i32, %arg2: memref<64x128xf32, #tpu.memory_space<vmem>>, %arg3: memref<128x16xf32, #tpu.memory_space<vmem>>, %arg4: memref<16x128xf32, #tpu.memory_space<vmem>>, %arg5: memref<64x128xf32, #tpu.memory_space<vmem>>) attributes {dimension_semantics = [#tpu.dimension_semantics<parallel>, #tpu.dimension_semantics<arbitrary>], iteration_bounds = array<i64: 1, 1>, scalar_prefetch = 0 : i64, scratch_operands = 0 : i64, tpu.core_type = #tpu.core_type<tc>, window_params = [{transform_indices = @transform_0, window_bounds = array<i64: 64, 128>}, {transform_indices = @transform_1, window_bounds = array<i64: 128, 16>}, {pipeline_mode = #tpu.pipeline_mode<synchronous>, transform_indices = @transform_2, window_bounds = array<i64: 16, 128>}, {transform_indices = @transform_3, window_bounds = array<i64: 64, 128>}]} {
    %c0 = arith.constant 0 : index
    %c0_0 = arith.constant 0 : index
    %0 = vector.load %arg2[%c0, %c0_0] : memref<64x128xf32, #tpu.memory_space<vmem>>, vector<64x128xf32>
    %c0_1 = arith.constant 0 : index
    %c0_2 = arith.constant 0 : index
    %1 = vector.load %arg3[%c0_1, %c0_2] : memref<128x16xf32, #tpu.memory_space<vmem>>, vector<128x16xf32>
    %c128_i32 = arith.constant 128 : i32
    %2 = arith.muli %arg1, %c128_i32 : i32
    %3 = tpu.iota {dimensions = array<i32: 1>} : vector<64x128xi32>
    %4 = vector.broadcast %2 : i32 to vector<64x128xi32>
    %5 = arith.addi %4, %3 : vector<64x128xi32>
    %c64_i32 = arith.constant 64 : i32
    %6 = vector.broadcast %c64_i32 : i32 to vector<64x128xi32>
    %7 = arith.cmpi slt, %5, %6 : vector<64x128xi32>
    %cst = arith.constant 0.000000e+00 : f32
    %8 = vector.broadcast %cst : f32 to vector<64x128xf32>
    %9 = arith.select %7, %0, %8 : vector<64x128xi1>, vector<64x128xf32>
    %10 = tpu.iota {dimensions = array<i32: 0>} : vector<128x16xi32>
    %11 = vector.broadcast %2 : i32 to vector<128x16xi32>
    %12 = arith.addi %11, %10 : vector<128x16xi32>
    %c64_i32_3 = arith.constant 64 : i32
    %13 = vector.broadcast %c64_i32_3 : i32 to vector<128x16xi32>
    %14 = arith.cmpi slt, %12, %13 : vector<128x16xi32>
    %cst_4 = arith.constant 0.000000e+00 : f32
    %15 = vector.broadcast %cst_4 : f32 to vector<128x16xf32>
    %16 = arith.select %14, %1, %15 : vector<128x16xi1>, vector<128x16xf32>
    %c0_5 = arith.constant 0 : index
    %c0_6 = arith.constant 0 : index
    %17 = vector.load %arg4[%c0_5, %c0_6] : memref<16x128xf32, #tpu.memory_space<vmem>>, vector<16x128xf32>
    %cst_7 = arith.constant dense<0.000000e+00> : vector<128x128xf32>
    %18 = tpu.matmul %16, %17, %cst_7 {dimension_numbers = #tpu.dot_dimension_numbers<[1], [0], [0], [1], [0, 0, 1, 1], [], []>} : vector<128x16xf32>, vector<16x128xf32>, vector<128x128xf32> -> vector<128x128xf32>
    %cst_8 = arith.constant dense<0.000000e+00> : vector<64x128xf32>
    %19 = tpu.matmul %9, %18, %cst_8 {dimension_numbers = #tpu.dot_dimension_numbers<[1], [0], [0], [1], [0, 0, 1, 1], [], []>} : vector<64x128xf32>, vector<128x128xf32>, vector<64x128xf32> -> vector<64x128xf32>
    %c0_i32 = arith.constant 0 : i32
    %20 = arith.cmpi eq, %arg1, %c0_i32 : i32
    %21 = arith.extui %20 : i1 to i32
    %c0_i32_9 = arith.constant 0 : i32
    %22 = arith.cmpi ne, %21, %c0_i32_9 : i32
    scf.if %22 {
      %c0_12 = arith.constant 0 : index
      %c0_13 = arith.constant 0 : index
      %26 = vector.load %arg5[%c0_12, %c0_13] : memref<64x128xf32, #tpu.memory_space<vmem>>, vector<64x128xf32>
      tpu.vector_store %arg5[%c0_12, %c0_13], %19 {strides = array<i32>} : memref<64x128xf32, #tpu.memory_space<vmem>>, vector<64x128xf32>,
    } else {
    }
    %c0_i32_10 = arith.constant 0 : i32
    %23 = arith.cmpi ne, %arg1, %c0_i32_10 : i32
    %24 = arith.extui %23 : i1 to i32
    %c0_i32_11 = arith.constant 0 : i32
    %25 = arith.cmpi ne, %24, %c0_i32_11 : i32
    scf.if %25 {
      %c0_12 = arith.constant 0 : index
      %c0_13 = arith.constant 0 : index
      %26 = vector.load %arg5[%c0_12, %c0_13] : memref<64x128xf32, #tpu.memory_space<vmem>>, vector<64x128xf32>
      %27 = arith.addf %26, %19 : vector<64x128xf32>
      %c0_14 = arith.constant 0 : index
      %c0_15 = arith.constant 0 : index
      %28 = vector.load %arg5[%c0_14, %c0_15] : memref<64x128xf32, #tpu.memory_space<vmem>>, vector<64x128xf32>
      tpu.vector_store %arg5[%c0_14, %c0_15], %27 {strides = array<i32>} : memref<64x128xf32, #tpu.memory_space<vmem>>, vector<64x128xf32>,
    } else {
    }
    return
  }
  func.func @transform_0(%arg0: i32, %arg1: i32) -> (i32, i32) {
    %c0_i32 = arith.constant 0 : i32
    return %arg0, %arg1 : i32, i32
  }
  func.func @transform_1(%arg0: i32, %arg1: i32) -> (i32, i32) {
    %c0_i32 = arith.constant 0 : i32
    %c0_i32_0 = arith.constant 0 : i32
    return %arg1, %c0_i32 : i32, i32
  }
  func.func @transform_2(%arg0: i32, %arg1: i32) -> (i32, i32) {
    %c0_i32 = arith.constant 0 : i32
    %c0_i32_0 = arith.constant 0 : i32
    %c0_i32_1 = arith.constant 0 : i32
    return %c0_i32, %c0_i32_0 : i32, i32
  }
  func.func @transform_3(%arg0: i32, %arg1: i32) -> (i32, i32) {
    %c0_i32 = arith.constant 0 : i32
    %c0_i32_0 = arith.constant 0 : i32
    return %arg0, %c0_i32 : i32, i32
  }
}

</mosaic_0001>

<bundles_post_ra>
// kernel: gnn_layer.1
= control target key start
LH: loop header
LB: loop body
LE: loop exit
PB: predicated region body
PF: predicated region fallthrough
CT: control target
= control target key end

     0   :  { %vm119_vm0 = vcmask 130048   ;;  %v353_v4 = vmov 0.0   ;;  %v39_v27 = vlaneseq  ;;  %s468_s2 = inlined_call_operand.vmem [shape: f32[16,128], index: 2, kind: input, shape index: {}]   ;;  %s469_s1 = inlined_call_operand.vmem [shape: f32[64,16], index: 1, kind: input, shape index: {}]   ;;  %s470_s0 = inlined_call_operand.vmem [shape: f32[64,64], index: 0, kind: input, shape index: {}]   ;;  %s471_s3 = inlined_call_operand.vmem [shape: f32[64,128], index: 3, kind: output, shape index: {}]  }
   0x1   :  { %v118_v0 = vld [vmem:[%s468_s2 + $0x8] sm:$0xff]  ;;  %v117_v1 = vld [vmem:[%s468_s2] sm:$0xff]  ;;  %v29_v2 = vld [vmem:[%s469_s1 + $0x38] sm:$0xff] }
   0x2   :  { %334 = vmatpush.msra.mxu2 %v118_v0  ;;  %182 = vmatpush.msra.mxu0 %v118_v0  ;;  %v22_v3 = vld [vmem:[%s469_s1] sm:$0xff]  ;;  %v23_v5 = vld [vmem:[%s469_s1 + $0x8] sm:$0xff]  ;;  %v24_v6 = vld [vmem:[%s469_s1 + $0x10] sm:$0xff]  ;;  %v40_v28 = vand.u32 127, %v39_v27 }
   0x3   :  { %v25_v7 = vld [vmem:[%s469_s1 + $0x18] sm:$0xff]  ;;  %v26_v8 = vld [vmem:[%s469_s1 + $0x20] sm:$0xff]  ;;  %v27_v9 = vld [vmem:[%s469_s1 + $0x28] sm:$0xff] }
   0x4   :  { %335 = vmatpush.msra.mxu2 %v117_v1  ;;  %183 = vmatpush.msra.mxu0 %v117_v1  ;;  %v28_v10 = vld [vmem:[%s469_s1 + $0x30] sm:$0xff]  ;;  %v14_v29 = vld [vmem:[%s470_s0] sm:$0xff]  ;;  %vm43_vm1 = vcmp.lt.s32.totalorder %v40_v28, 64  ;;  %v19_v30 = vld [vmem:[%s470_s0 + $0x28] sm:$0xff] }
   0x5   :  { %325 = vmatmul.msk.f32.vlgmr.msra.gmra.mxu2 %vm119_vm0, %v29_v2  ;;  %318 = vmatmul.msk.f32.vlgmr.msra.gmra.mxu0 %vm119_vm0, %v22_v3  ;;  %v15_v31 = vld [vmem:[%s470_s0 + $0x8] sm:$0xff]  ;;  %v20_v32 = vld [vmem:[%s470_s0 + $0x30] sm:$0xff]  ;;  %v21_v34 = vld [vmem:[%s470_s0 + $0x38] sm:$0xff] }
   0x6   :  { %v16_v33 = vld [vmem:[%s470_s0 + $0x10] sm:$0xff]  ;;  %v17_v35 = vld [vmem:[%s470_s0 + $0x18] sm:$0xff]  ;;  %v18_v36 = vld [vmem:[%s470_s0 + $0x20] sm:$0xff] }
   0xd   :  { %208 = vmatmul.f32.gmra.mxu2 %v353_v4  ;;  %319 = vmatmul.msk.f32.gmra.mxu0 %vm119_vm0, %v23_v5 }
  0x15   :  { %211 = vmatmul.f32.gmra.mxu2 %v353_v4  ;;  %320 = vmatmul.msk.f32.gmra.mxu0 %vm119_vm0, %v24_v6 }
  0x1d   :  { %214 = vmatmul.f32.gmra.mxu2 %v353_v4  ;;  %321 = vmatmul.msk.f32.gmra.mxu0 %vm119_vm0, %v25_v7 }
  0x25   :  { %217 = vmatmul.f32.gmra.mxu2 %v353_v4  ;;  %322 = vmatmul.msk.f32.gmra.mxu0 %vm119_vm0, %v26_v8 }
  0x2d   :  { %220 = vmatmul.f32.gmra.mxu2 %v353_v4  ;;  %323 = vmatmul.msk.f32.gmra.mxu0 %vm119_vm0, %v27_v9 }
  0x35   :  { %223 = vmatmul.f32.gmra.mxu2 %v353_v4  ;;  %324 = vmatmul.msk.f32.gmra.mxu0 %vm119_vm0, %v28_v10 }
  0x3d   :  { %226 = vmatmul.f32.gmra.mxu2 %v353_v4 }
  0x45   :  { %229 = vmatmul.f32.gmra.mxu2 %v353_v4 }
  0x82   :  { %v185_v14 = vpop.f32.mrf.mxu0 }
  0x88   :  { %v206_v11 = vpop.f32.mrf.mxu2 }
  0x8a   :  { %v188_v16 = vpop.f32.mrf.mxu0 }
  0x90   :  { %v209_v12 = vpop.f32.mrf.mxu2 }
  0x92   :  { %v191_v19 = vpop.f32.mrf.mxu0 }
  0x98   :  { %v212_v13 = vpop.f32.mrf.mxu2 }
  0x9a   :  { %v194_v21 = vpop.f32.mrf.mxu0 }
  0xa0   :  { %v215_v15 = vpop.f32.mrf.mxu2 }
  0xa2   :  { %v197_v23 = vpop.f32.mrf.mxu0 }
  0xa8   :  { %v218_v17 = vpop.f32.mrf.mxu2 }
  0xaa   :  { %v200_v25 = vpop.f32.mrf.mxu0 }
  0xb0   :  { %v221_v18 = vpop.f32.mrf.mxu2 }
  0xb2   :  { %v203_v26 = vpop.f32.mrf.mxu0 }
  0xb8   :  { %v224_v20 = vpop.f32.mrf.mxu2 }
  0xc0   :  { %v227_v22 = vpop.f32.mrf.mxu2 }
  0xc8   :  { %v230_v24 = vpop.f32.mrf.mxu2 }
  0xc9   :  { %233 = vmatpush.msra.mxu1 %v230_v24  ;;  %336 = vmatpush.msra.mxu3 %v230_v24 }
  0xcb   :  { %234 = vmatpush.msra.mxu1 %v227_v22  ;;  %337 = vmatpush.msra.mxu3 %v227_v22 }
  0xcd   :  { %235 = vmatpush.msra.mxu1 %v224_v20  ;;  %338 = vmatpush.msra.mxu3 %v224_v20 }
  0xcf   :  { %236 = vmatpush.msra.mxu1 %v221_v18  ;;  %339 = vmatpush.msra.mxu3 %v221_v18 }
  0xd1   :  { %237 = vmatpush.msra.mxu1 %v218_v17  ;;  %340 = vmatpush.msra.mxu3 %v218_v17 }
  0xd3   :  { %238 = vmatpush.msra.mxu1 %v215_v15  ;;  %341 = vmatpush.msra.mxu3 %v215_v15 }
  0xd5   :  { %239 = vmatpush.msra.mxu1 %v212_v13  ;;  %342 = vmatpush.msra.mxu3 %v212_v13 }
  0xd7   :  { %240 = vmatpush.msra.mxu1 %v209_v12  ;;  %343 = vmatpush.msra.mxu3 %v209_v12 }
  0xd9   :  { %241 = vmatpush.msra.mxu1 %v206_v11  ;;  %344 = vmatpush.msra.mxu3 %v206_v11 }
  0xdb   :  { %242 = vmatpush.msra.mxu1 %v203_v26  ;;  %345 = vmatpush.msra.mxu3 %v203_v26 }
  0xdd   :  { %243 = vmatpush.msra.mxu1 %v200_v25  ;;  %346 = vmatpush.msra.mxu3 %v200_v25 }
  0xdf   :  { %244 = vmatpush.msra.mxu1 %v197_v23  ;;  %347 = vmatpush.msra.mxu3 %v197_v23 }
  0xe1   :  { %245 = vmatpush.msra.mxu1 %v194_v21  ;;  %348 = vmatpush.msra.mxu3 %v194_v21 }
  0xe3   :  { %246 = vmatpush.msra.mxu1 %v191_v19  ;;  %349 = vmatpush.msra.mxu3 %v191_v19 }
  0xe5   :  { %247 = vmatpush.msra.mxu1 %v188_v16  ;;  %350 = vmatpush.msra.mxu3 %v188_v16 }
  0xe7   :  { %248 = vmatpush.msra.mxu1 %v185_v14  ;;  %351 = vmatpush.msra.mxu3 %v185_v14 }
  0xe8   :  { %326 = vmatmul.msk.f32.vlgmr.msra.gmra.mxu1 %vm43_vm1, %v14_v29  ;;  %331 = vmatmul.msk.f32.vlgmr.msra.gmra.mxu3 %vm43_vm1, %v19_v30 }
  0xf0   :  { %327 = vmatmul.msk.f32.gmra.mxu1 %vm43_vm1, %v15_v31  ;;  %332 = vmatmul.msk.f32.gmra.mxu3 %vm43_vm1, %v20_v32 }
  0xf8   :  { %328 = vmatmul.msk.f32.gmra.mxu1 %vm43_vm1, %v16_v33  ;;  %333 = vmatmul.msk.f32.gmra.mxu3 %vm43_vm1, %v21_v34 }
 0x100   :  { %329 = vmatmul.msk.f32.gmra.mxu1 %vm43_vm1, %v17_v35 }
 0x108   :  { %330 = vmatmul.msk.f32.gmra.mxu1 %vm43_vm1, %v18_v36 }
 0x165   :  { %v250_v37 = vpop.f32.mrf.mxu1 }
 0x166   :  { %278 = vst [vmem:[%s471_s3] sm:$0xff] %v250_v37 }
 0x16b   :  { %v265_v38 = vpop.f32.mrf.mxu3 }
 0x16c   :  { %283 = vst [vmem:[%s471_s3 + $0x28] sm:$0xff] %v265_v38 }
 0x16d   :  { %v253_v39 = vpop.f32.mrf.mxu1 }
 0x16e   :  { %279 = vst [vmem:[%s471_s3 + $0x8] sm:$0xff] %v253_v39 }
 0x173   :  { %v268_v40 = vpop.f32.mrf.mxu3 }
 0x174   :  { %284 = vst [vmem:[%s471_s3 + $0x30] sm:$0xff] %v268_v40 }
 0x175   :  { %v256_v41 = vpop.f32.mrf.mxu1 }
 0x176   :  { %280 = vst [vmem:[%s471_s3 + $0x10] sm:$0xff] %v256_v41 }
 0x17b   :  { %v271_v42 = vpop.f32.mrf.mxu3 }
 0x17c   :  { %285 = vst [vmem:[%s471_s3 + $0x38] sm:$0xff] %v271_v42 }
 0x17d   :  { %v259_v43 = vpop.f32.mrf.mxu1 }
 0x17e   :  { %281 = vst [vmem:[%s471_s3 + $0x18] sm:$0xff] %v259_v43 }
 0x185   :  { %v262_v44 = vpop.f32.mrf.mxu1 }
 0x186   :  { %282 = vst [vmem:[%s471_s3 + $0x20] sm:$0xff] %v262_v44 }

</bundles_post_ra>
